<compile_context>
chip_gen: v7x
topology: tpu7x:2x2x1
jax: 0.10.0
libtpu: 0.0.40
codegen_flags: <defaults>
</compile_context>

<pallas_src>
import math
from functools import partial

import jax
import jax.numpy as jnp
from jax import lax
from jax.experimental import pallas as pl
from jax.experimental.pallas import tpu as pltpu


# ----------------------------------------------------------------------------
# tiling helpers
# ----------------------------------------------------------------------------
def _round_up(v, m):
    return ((v + m - 1) // m) * m


def _tile(dim, base, maxt):
    """Return (tile, padded_dim): full (base-aligned) dim when small, else maxt."""
    d = _round_up(dim, base)
    if d <= maxt:
        return d, d
    return maxt, _round_up(d, maxt)


# ----------------------------------------------------------------------------
# Pallas kernel: tiled linear  y = act(x @ w + b)
# ----------------------------------------------------------------------------
def _mm_kernel(x_ref, w_ref, b_ref, o_ref, acc_ref, *, act):
    @pl.when(pl.program_id(2) == 0)
    def _():
        acc_ref[...] = jnp.zeros_like(acc_ref)

    acc_ref[...] += jnp.dot(x_ref[...], w_ref[...],
                            preferred_element_type=jnp.float32)

    @pl.when(pl.program_id(2) == pl.num_programs(2) - 1)
    def _():
        acc = acc_ref[...] + b_ref[...]
        if act == "relu":
            acc = jnp.maximum(acc, 0.0)
        elif act == "silu":
            acc = acc * jax.nn.sigmoid(acc)
        o_ref[...] = acc.astype(o_ref.dtype)


@partial(jax.jit, static_argnames=("act", "out_dtype"))
def _pallas_linear_2d(x2, w, b, *, act, out_dtype):
    M, K = x2.shape
    N = w.shape[1]
    tm, Mp = _tile(M, 8, 512)
    tn, Np = _tile(N, 128, 512)
    tk, Kp = _tile(K, 128, 1024)
    # cast to bf16 BEFORE padding (no f32 padded intermediate in HBM)
    xb = jnp.pad(x2.astype(jnp.bfloat16), ((0, Mp - M), (0, Kp - K)))
    wb = jnp.pad(w.astype(jnp.bfloat16), ((0, Kp - K), (0, Np - N)))
    bb = jnp.pad(b.astype(jnp.float32).reshape(1, N), ((0, 0), (0, Np - N)))
    out = pl.pallas_call(
        partial(_mm_kernel, act=act),
        out_shape=jax.ShapeDtypeStruct((Mp, Np), out_dtype),
        grid=(Mp // tm, Np // tn, Kp // tk),
        in_specs=[
            pl.BlockSpec((tm, tk), lambda i, j, k: (i, k)),
            pl.BlockSpec((tk, tn), lambda i, j, k: (k, j)),
            pl.BlockSpec((1, tn), lambda i, j, k: (0, j)),
        ],
        out_specs=pl.BlockSpec((tm, tn), lambda i, j, k: (i, j)),
        scratch_shapes=[pltpu.VMEM((tm, tn), jnp.float32)],
        compiler_params=pltpu.CompilerParams(
            dimension_semantics=("parallel", "parallel", "arbitrary")),
    )(xb, wb, bb)
    return out[:M, :N]


def pallas_linear(x, w, b=None, act="none", out_dtype=jnp.float32):
    """y = act(x @ w + b); x: (..., K), w: (K, N), bf16 MXU operands."""
    K = x.shape[-1]
    N = w.shape[1]
    if b is None:
        b = jnp.zeros((N,), jnp.float32)
    out = _pallas_linear_2d(x.reshape(-1, K), w, b, act=act, out_dtype=out_dtype)
    return out.reshape(*x.shape[:-1], N)


# ----------------------------------------------------------------------------
# in-kernel "same"-padded conv1d helper (bf16 halo + im2col VMEM scratch)
# ----------------------------------------------------------------------------
_HALO = 8   # front halo rows (>= max K//2); multiple of 8 keeps the body store aligned
_TAIL = 8   # tail rows (>= max K//2)


def _conv_same(pad_ref, col_ref, xm, w_ref, b_ref, *, K, Cin, Cin_p):
    """1D same conv of bf16 xm (N, Cin) with packed weight (K*Cin_p, Cout)."""
    pad = K // 2
    N = xm.shape[0]
    # halo-only zero fill: front _HALO rows + _TAIL tail rows; the body rows
    # are fully overwritten by xm so no full-slab zeroing is needed.
    pad_ref[pl.ds(0, _HALO), :] = jnp.zeros((_HALO, Cin), pad_ref.dtype)
    pad_ref[pl.ds(_HALO + N, _TAIL), :] = jnp.zeros((_TAIL, Cin), pad_ref.dtype)
    pad_ref[pl.ds(_HALO, N), :] = xm                     # aligned body store
    # im2col: one deep (K*Cin_p) contraction instead of K shallow matmuls.
    for k in range(K):                                   # static K (3 or 7)
        lo = k * Cin_p
        col_ref[:, lo:lo + Cin] = pad_ref[pl.ds(_HALO - pad + k, N), :]
        if Cin_p > Cin:                                  # keep pad columns zero
            col_ref[:, lo + Cin:lo + Cin_p] = jnp.zeros((N, Cin_p - Cin),
                                                        col_ref.dtype)
    return jnp.dot(col_ref[...], w_ref[...],
                   preferred_element_type=jnp.float32) + b_ref[...]


def _pixel_norm_silu(h):
    # PixelNorm (meshgpt: F.normalize * sqrt(C), eps=1e-4) + SiLU, via rsqrt (EUP).
    C = h.shape[-1]
    ss = jnp.sum(h * h, axis=-1, keepdims=True)
    h = h * (lax.rsqrt(jnp.maximum(ss, 1e-8)) * math.sqrt(C))
    return h * jax.nn.sigmoid(h)


def _pack_conv_weight(w):
    """(K, Cin, Cout) f32 -> (K*Cin_p, Cout) bf16 with Cin padded to 128."""
    K, Cin, Cout = w.shape
    Cin_p = _round_up(Cin, 128)
    wp = jnp.pad(w, ((0, 0), (0, Cin_p - Cin), (0, 0)))
    return wp.reshape(K * Cin_p, Cout).astype(jnp.bfloat16), Cin_p


# ----------------------------------------------------------------------------
# Pallas kernel: fused init decoder conv (conv7 + SiLU + LayerNorm), bf16 I/O
# ----------------------------------------------------------------------------
def _init_decoder_kernel(x_ref, m_ref, w_ref, b_ref, g_ref, beta_ref, o_ref,
                         pad_ref, col_ref, *, K, Cin, Cin_p):
    xm = x_ref[0] * m_ref[0].astype(x_ref.dtype)             # bf16 masked input
    h = _conv_same(pad_ref, col_ref, xm, w_ref, b_ref, K=K, Cin=Cin, Cin_p=Cin_p)
    h = h * jax.nn.sigmoid(h)                                 # SiLU (f32)
    mu = jnp.mean(h, axis=-1, keepdims=True)                  # LayerNorm (channels)
    var = jnp.mean(jnp.square(h - mu), axis=-1, keepdims=True)
    h = (h - mu) * lax.rsqrt(var + 1e-5) * g_ref[...] + beta_ref[...]
    o_ref[...] = h.astype(o_ref.dtype)[None]


@jax.jit
def _pallas_init_decoder(x, maskf, w, b, g, beta):
    B, N, Cin = x.shape
    K, _, Cout = w.shape
    wp, Cin_p = _pack_conv_weight(w)
    return pl.pallas_call(
        partial(_init_decoder_kernel, K=K, Cin=Cin, Cin_p=Cin_p),
        out_shape=jax.ShapeDtypeStruct((B, N, Cout), jnp.bfloat16),
        grid=(B,),
        in_specs=[
            pl.BlockSpec((1, N, Cin), lambda bi: (bi, 0, 0)),
            pl.BlockSpec((1, N, 1), lambda bi: (bi, 0, 0)),
            pl.BlockSpec((K * Cin_p, Cout), lambda bi: (0, 0)),
            pl.BlockSpec((1, Cout), lambda bi: (0, 0)),
            pl.BlockSpec((1, Cout), lambda bi: (0, 0)),
            pl.BlockSpec((1, Cout), lambda bi: (0, 0)),
        ],
        out_specs=pl.BlockSpec((1, N, Cout), lambda bi: (bi, 0, 0)),
        scratch_shapes=[pltpu.VMEM((_HALO + N + _TAIL, Cin), jnp.bfloat16),
                        pltpu.VMEM((N, K * Cin_p), jnp.bfloat16)],
        compiler_params=pltpu.CompilerParams(
            dimension_semantics=("parallel",),
            vmem_limit_bytes=64 * 1024 * 1024),
    )(x, maskf, wp, b.reshape(1, Cout), g.reshape(1, Cout), beta.reshape(1, Cout))


# ----------------------------------------------------------------------------
# Pallas kernel: fused ResnetBlock (bf16 in / bf16 out)
#   (mask->conv3->mask->pixelnorm->silu) x2 -> squeeze-excite -> (+ residual)
# ----------------------------------------------------------------------------
def _resnet_kernel(*refs, has_res, K, Cin, Cin_p, Cout, Cout_p):
    if has_res:
        (x_ref, m_ref, w1_ref, b1_ref, w2_ref, b2_ref,
         sw1_ref, sb1_ref, sw2_ref, sb2_ref, rw_ref, rb_ref,
         o_ref, xpad_ref, xcol_ref, hpad_ref, hcol_ref) = refs
    else:
        (x_ref, m_ref, w1_ref, b1_ref, w2_ref, b2_ref,
         sw1_ref, sb1_ref, sw2_ref, sb2_ref,
         o_ref, xpad_ref, xcol_ref, hpad_ref, hcol_ref) = refs
        rw_ref = rb_ref = None

    x = x_ref[0]                                 # (N, Cin) bf16
    m = m_ref[0]                                 # (N, 1)  f32
    xm = x * m.astype(x.dtype)                   # bf16 masked (mask is 0/1)

    h = _conv_same(xpad_ref, xcol_ref, xm, w1_ref, b1_ref,
                   K=K, Cin=Cin, Cin_p=Cin_p)                     # block1 conv3
    h = _pixel_norm_silu(h * m)
    h = _conv_same(hpad_ref, hcol_ref, h.astype(jnp.bfloat16), w2_ref, b2_ref,
                   K=K, Cin=Cout, Cin_p=Cout_p)                   # block2 conv3
    h = _pixel_norm_silu(h * m)

    # squeeze-excite (masked mean over sequence)
    num = jnp.sum(h * m, axis=0, keepdims=True)                   # (1, Cout)
    den = jnp.maximum(jnp.sum(m), 1e-5)
    s = jnp.dot(num / den, sw1_ref[...],
                preferred_element_type=jnp.float32) + sb1_ref[...]
    s = s * jax.nn.sigmoid(s)
    gate = jax.nn.sigmoid(
        jnp.dot(s, sw2_ref[...], preferred_element_type=jnp.float32) + sb2_ref[...])
    h = h * gate

    if has_res:
        res = jnp.dot(x, rw_ref[...], preferred_element_type=jnp.float32) + rb_ref[...]
    else:
        res = x.astype(jnp.float32)
    o_ref[...] = (h + res).astype(o_ref.dtype)[None]


@partial(jax.jit, static_argnames=("has_res",))
def _pallas_resnet(x, maskf, w1, b1, w2, b2, sw1, sb1, sw2, sb2, *res, has_res):
    # TODO(synk): whole-sequence blocks per batch; add N-tiling (with SE as a
    # 2-pass) for very long sequences on v7x's 64 MiB VMEM.
    B, N, Cin = x.shape
    K, _, Cout = w1.shape
    inner = sw1.shape[1]
    w1p, Cin_p = _pack_conv_weight(w1)
    w2p, Cout_p = _pack_conv_weight(w2)
    args = [x, maskf, w1p, b1.reshape(1, Cout), w2p, b2.reshape(1, Cout),
            sw1, sb1.reshape(1, inner), sw2, sb2.reshape(1, Cout)]
    in_specs = [
        pl.BlockSpec((1, N, Cin), lambda bi: (bi, 0, 0)),
        pl.BlockSpec((1, N, 1), lambda bi: (bi, 0, 0)),
        pl.BlockSpec((K * Cin_p, Cout), lambda bi: (0, 0)),
        pl.BlockSpec((1, Cout), lambda bi: (0, 0)),
        pl.BlockSpec((K * Cout_p, Cout), lambda bi: (0, 0)),
        pl.BlockSpec((1, Cout), lambda bi: (0, 0)),
        pl.BlockSpec((Cout, inner), lambda bi: (0, 0)),
        pl.BlockSpec((1, inner), lambda bi: (0, 0)),
        pl.BlockSpec((inner, Cout), lambda bi: (0, 0)),
        pl.BlockSpec((1, Cout), lambda bi: (0, 0)),
    ]
    if has_res:
        rw, rb = res
        args += [rw.astype(jnp.bfloat16), rb.reshape(1, Cout)]
        in_specs += [pl.BlockSpec((Cin, Cout), lambda bi: (0, 0)),
                     pl.BlockSpec((1, Cout), lambda bi: (0, 0))]
    return pl.pallas_call(
        partial(_resnet_kernel, has_res=has_res, K=K, Cin=Cin, Cin_p=Cin_p,
                Cout=Cout, Cout_p=Cout_p),
        out_shape=jax.ShapeDtypeStruct((B, N, Cout), jnp.bfloat16),
        grid=(B,),
        in_specs=in_specs,
        out_specs=pl.BlockSpec((1, N, Cout), lambda bi: (bi, 0, 0)),
        scratch_shapes=[pltpu.VMEM((_HALO + N + _TAIL, Cin), jnp.bfloat16),
                        pltpu.VMEM((N, K * Cin_p), jnp.bfloat16),
                        pltpu.VMEM((_HALO + N + _TAIL, Cout), jnp.bfloat16),
                        pltpu.VMEM((N, K * Cout_p), jnp.bfloat16)],
        compiler_params=pltpu.CompilerParams(
            dimension_semantics=("parallel",),
            vmem_limit_bytes=64 * 1024 * 1024),
    )(*args)


# ----------------------------------------------------------------------------
# Pallas kernel: to_coor matmul FUSED with the masked Gaussian-blurred soft
# cross-entropy (logits never hit HBM; loss accumulated in a resident block)
# ----------------------------------------------------------------------------
def _gauss_taps(sigma):
    width = int(math.ceil(sigma * 5))
    width += (width + 1) % 2
    half = width // 2
    g = [math.exp(-((i - half) ** 2) / (2.0 * sigma * sigma)) for i in range(width)]
    s = sum(g)
    return tuple(v / s for v in g)


def _to_coor_loss_kernel(x_ref, w_ref, b_ref, tgt_ref, mask_ref, o_ref,
                         *, gvals, C, V):
    @pl.when(pl.program_id(0) == 0)
    def _():
        o_ref[...] = jnp.zeros_like(o_ref)

    logits = jnp.dot(x_ref[...], w_ref[...],
                     preferred_element_type=jnp.float32) + b_ref[...]   # (tm, V*C)
    tm = logits.shape[0]
    t_all = tgt_ref[...]                                                # (tm, V) int32
    maskv = mask_ref[...]                                               # (tm, 1) f32
    col = lax.broadcasted_iota(jnp.int32, (tm, C), 1)
    half = (len(gvals) - 1) // 2
    total = jnp.zeros((tm, 1), jnp.float32)
    for v in range(V):                                                  # static (6)
        lg = logits[:, v * C:(v + 1) * C]
        mx = jnp.max(lg, axis=-1, keepdims=True)
        lse = mx + jnp.log(jnp.sum(jnp.exp(lg - mx), axis=-1, keepdims=True))
        logp = lg - lse
        t = t_all[:, v:v + 1]
        ce = jnp.zeros((tm, 1), jnp.float32)
        for j, g in enumerate(gvals):                                   # static taps
            sel = col == (t + (j - half))     # out-of-range tap -> 0 (zero-pad blur)
            ce = ce - g * jnp.sum(jnp.where(sel, logp, 0.0), axis=-1, keepdims=True)
        total = total + ce
    o_ref[...] += jnp.sum(total * maskv)


@partial(jax.jit, static_argnames=("gvals", "num_classes"))
def _pallas_to_coor_loss(x2, w, b, tgt, maskf, *, gvals, num_classes):
    M, Kd = x2.shape
    NV = w.shape[1]
    C = num_classes
    V = NV // C
    tm, Mp = _tile(M, 8, 512)
    xb = jnp.pad(x2.astype(jnp.bfloat16), ((0, Mp - M), (0, 0)))
    tgtp = jnp.pad(tgt, ((0, Mp - M), (0, 0)))
    mp = jnp.pad(maskf, ((0, Mp - M), (0, 0)))
    wb = w.astype(jnp.bfloat16)
    bb = b.astype(jnp.float32).reshape(1, NV)
    out = pl.pallas_call(
        partial(_to_coor_loss_kernel, gvals=gvals, C=C, V=V),
        out_shape=jax.ShapeDtypeStruct((8, 128), jnp.float32),
        grid=(Mp // tm,),
        in_specs=[
            pl.BlockSpec((tm, Kd), lambda i: (i, 0)),
            pl.BlockSpec((Kd, NV), lambda i: (0, 0)),
            pl.BlockSpec((1, NV), lambda i: (0, 0)),
            pl.BlockSpec((tm, V), lambda i: (i, 0)),
            pl.BlockSpec((tm, 1), lambda i: (i, 0)),
        ],
        out_specs=pl.BlockSpec((8, 128), lambda i: (0, 0)),
        compiler_params=pltpu.CompilerParams(dimension_semantics=("arbitrary",)),
    )(xb, wb, bb, tgtp, mp)
    return out[0, 0]


# ----------------------------------------------------------------------------
# JAX glue (discretize, norms, scatter-mean, ...)
# ----------------------------------------------------------------------------
def discretize(t, *, continuous_range, num_discrete):
    lo, hi = continuous_range
    t = (t - lo) / (hi - lo)
    t = t * num_discrete - 0.5
    return jnp.clip(jnp.round(t).astype(jnp.int32), 0, num_discrete - 1)


def layer_norm(x, g, b, eps=1e-5):
    mu = x.mean(-1, keepdims=True)
    var = ((x - mu) ** 2).mean(-1, keepdims=True)
    return (x - mu) / jnp.sqrt(var + eps) * g + b


def l2_normalize(x, eps=1e-12):
    return x / jnp.clip(jnp.linalg.norm(x, axis=-1, keepdims=True), eps, None)


def scatter_mean(tgt, idx, src, eps=1e-5):
    """tgt (b, M, D), idx (b, N), src (b, N, D); mean-scatter along dim -2."""
    def one(t, i, s):
        num = t.at[i].add(s)
        den = jnp.zeros((t.shape[0], 1), jnp.float32).at[i].add(
            jnp.ones((s.shape[0], 1), jnp.float32))
        return num / jnp.clip(den, eps, None)
    return jax.vmap(one)(tgt, idx, src)


# ----------------------------------------------------------------------------
# Parameter construction (deterministic)
# ----------------------------------------------------------------------------
class ParamMaker:
    def __init__(self, key):
        self.key = key

    def _nxt(self):
        self.key, k = jax.random.split(self.key)
        return k

    def dense(self, din, dout, bias=True):
        w = jax.random.normal(self._nxt(), (din, dout), jnp.float32) / math.sqrt(din)
        b = jnp.zeros((dout,), jnp.float32) if bias else None
        return {"w": w, "b": b}

    def embed(self, num, dim):
        return jax.random.normal(self._nxt(), (num, dim), jnp.float32) * 0.02

    def conv(self, cin, cout, k):
        w = jax.random.normal(self._nxt(), (k, cin, cout), jnp.float32) / math.sqrt(cin * k)
        return {"w": w, "b": jnp.zeros((cout,), jnp.float32)}

    def ln(self, dim):
        return {"g": jnp.ones((dim,), jnp.float32), "b": jnp.zeros((dim,), jnp.float32)}

    def sage(self, din, dout):
        return {"proj": self.dense(din, din),
                "lin_l": self.dense(din, dout, bias=True),
                "lin_r": self.dense(din, dout, bias=False)}

    def squeeze_excite(self, dim):
        inner = max(dim // 4, 16)
        d1, d2 = self.dense(dim, inner), self.dense(inner, dim)
        return {"w1": d1["w"], "b1": d1["b"], "w2": d2["w"], "b2": d2["b"]}

    def resnet(self, din, dout):
        p = {"block1": self.conv(din, dout, 3),
             "block2": self.conv(dout, dout, 3),
             "se": self.squeeze_excite(dout)}
        if din != dout:
            rd = self.dense(din, dout)
            p["res_w"], p["res_b"] = rd["w"], rd["b"]
        return p


# ----------------------------------------------------------------------------
# Model
# ----------------------------------------------------------------------------
class SegmentVQVAEPallas:
    def __init__(self, key):
        self.num_discrete_coors = 128
        self.coor_range = (-1.0, 1.0)
        self.num_quantizers = 2
        self.codebook_size = 8192
        self.codebook_dim = int(math.log2(self.codebook_size))  # 13
        self.dim_codebook = 192
        self.pad_id = -1
        self.commit_loss_weight = 0.1
        self.bin_smooth_blur_sigma = 0.4
        self._gvals = (_gauss_taps(self.bin_smooth_blur_sigma)
                       if self.bin_smooth_blur_sigma >= 0 else (1.0,))

        pm = ParamMaker(key)
        dim_coor, dim_len, dim_dir, dim_midp, dim_ang = 64, 16, 64, 16, 16
        init_dim = dim_coor * 6 + dim_len + dim_dir * 3 + dim_ang + dim_midp * 3  # 656

        enc_dims = (64, 128, 256, 256, 384)
        dec_dims = (128, 128, 128, 128, 192, 192, 192, 192,
                    256, 256, 256, 256, 256, 256, 384, 384, 384)

        p = {}
        p["coor_embed"] = pm.embed(128, dim_coor)
        p["length_embed"] = pm.embed(128, dim_len)
        p["midp_embed"] = pm.embed(128, dim_midp)
        p["direction_embed"] = pm.embed(128, dim_dir)
        p["angle_embed"] = pm.embed(128, dim_ang)
        p["project_in"] = pm.dense(init_dim, self.dim_codebook)

        init_enc, *rest_enc = enc_dims
        p["init_sage_conv"] = pm.sage(self.dim_codebook, init_enc)
        p["init_norm"] = pm.ln(init_enc)
        p["encoders"] = []
        curr = init_enc
        for d in rest_enc:
            p["encoders"].append(pm.sage(curr, d))
            curr = d
        self.encoder_out_dim = curr  # 384

        p["project_dim_codebook"] = pm.dense(curr, self.dim_codebook * 2)
        p["quantizer"] = {"proj_in": pm.dense(self.dim_codebook, self.codebook_dim),
                          "proj_out": pm.dense(self.codebook_dim, self.dim_codebook)}

        init_dec, *rest_dec = dec_dims
        p["init_decoder_conv"] = pm.conv(self.dim_codebook * 2, init_dec, 7)
        p["init_decoder_norm"] = pm.ln(init_dec)
        p["decoders"] = []
        curr = init_dec
        for d in rest_dec:
            p["decoders"].append(pm.resnet(curr, d))
            curr = d
        p["to_coor"] = pm.dense(curr, self.num_discrete_coors * 6)
        self.params = p

    # -------------------- graph conv --------------------
    def _sage_conv(self, pr, x, edge_index):
        # PyG SAGEConv(project=True, normalize=True, aggr='mean')
        xp = pallas_linear(x, pr["proj"]["w"], pr["proj"]["b"], act="relu")
        src, dst = edge_index[0], edge_index[1]
        agg_sum = jnp.zeros_like(xp).at[dst].add(xp[src])
        cnt = jnp.zeros((xp.shape[0], 1), jnp.float32).at[dst].add(1.0)
        agg = agg_sum / jnp.clip(cnt, 1.0, None)
        # fused lin_l/lin_r: one wider-K matmul (lin_r has no bias)
        cat = jnp.concatenate([agg, x.astype(agg.dtype)], axis=-1)
        wcat = jnp.concatenate([pr["lin_l"]["w"], pr["lin_r"]["w"]], axis=0)
        out = pallas_linear(cat, wcat, pr["lin_l"]["b"])
        return l2_normalize(out)

    # -------------------- encode --------------------
    def encode(self, vertices, segments, segment_edges, segment_mask, segment_edges_mask):
        p = self.params
        b, nv, _ = vertices.shape
        _, nl, _ = segments.shape
        _, ne, _ = segment_edges.shape

        seg_wo_pad = jnp.where(segment_mask[..., None], segments, 0)
        segment_coords = jax.vmap(lambda v, s: v[s])(vertices, seg_wo_pad)       # (b,nl,2,3)
        edge_wo_pad = jnp.where(segment_edges_mask[..., None], segment_edges, 0)
        segment_edge_coords = jax.vmap(lambda sc, se: sc[se])(segment_coords,
                                                              edge_wo_pad)       # (b,e,2,2,3)

        # derived per-segment features
        v0, v1 = segment_coords[..., 0, :], segment_coords[..., 1, :]
        midps = (v0 + v1) * 0.5
        diff = v1 - v0
        length = jnp.linalg.norm(diff, axis=-1, keepdims=True)
        directions = diff / jnp.clip(length, 1e-5, None)

        # derived per-edge feature: angle between the two segments
        de = segment_edge_coords[..., 1, :] - segment_edge_coords[..., 0, :]     # (b,e,2,3)
        de = de / jnp.clip(jnp.linalg.norm(de, axis=-1, keepdims=True), 1e-5, None)
        cosang = jnp.abs(jnp.sum(de[..., 0, :] * de[..., 1, :], axis=-1))
        angle = jnp.arccos(jnp.clip(cosang, -1.0, 1.0))                          # (b,e)

        midp_embed = p["midp_embed"][discretize(midps, continuous_range=self.coor_range,
                                                 num_discrete=128)]
        length_embed = p["length_embed"][discretize(length, continuous_range=(0.0, 2.0),
                                                    num_discrete=128)]
        direction_embed = p["direction_embed"][discretize(directions,
                                                          continuous_range=self.coor_range,
                                                          num_discrete=128)]
        edge_angle_embed = p["angle_embed"][discretize(angle,
                                                       continuous_range=(0.0, math.pi / 2.0),
                                                       num_discrete=128)]        # (b,e,16)

        # average edge-angle embeddings onto the incident segments
        dim_angle = edge_angle_embed.shape[-1]
        segment_angle_embed = jnp.zeros((b, nl + 1, dim_angle), jnp.float32)
        edge_angle_rep = jnp.repeat(edge_angle_embed, 2, axis=1)                 # (b,2e,16)
        edges_fill = jnp.where(segment_edges_mask[..., None], edge_wo_pad, nl)
        edges_index = edges_fill.reshape(b, ne * 2)
        averaged = scatter_mean(segment_angle_embed, edges_index, edge_angle_rep)
        angle_embed = averaged[:, :nl, :]

        discrete_segment_coords = discretize(segment_coords,
                                             continuous_range=self.coor_range,
                                             num_discrete=128).reshape(b, nl, 6)
        coor_embed = p["coor_embed"][discrete_segment_coords].reshape(b, nl, -1)

        segment_embed = jnp.concatenate([
            coor_embed,
            length_embed.reshape(b, nl, -1),
            direction_embed.reshape(b, nl, -1),
            angle_embed,
            midp_embed.reshape(b, nl, -1),
        ], axis=-1)                                                              # (b,nl,656)
        # project_in: 656 padded to a lane-dense K inside pallas_linear; bf16 out
        segment_embed = pallas_linear(segment_embed, p["project_in"]["w"],
                                      p["project_in"]["b"],
                                      out_dtype=jnp.bfloat16)                    # (b,nl,192)

        # pack valid segments and build the global edge index
        # TODO(synk): boolean-mask packing has data-dependent shapes -> eager only.
        counts = segment_mask.astype(jnp.int32).sum(axis=-1)
        offsets = jnp.concatenate([jnp.zeros((1,), jnp.int32), jnp.cumsum(counts)[:-1]])
        edges_off = segment_edges + offsets[:, None, None]
        edges_valid = edges_off.reshape(-1, 2)[segment_edges_mask.reshape(-1)]   # (Ev,2)
        edge_index = edges_valid.T                                               # (2,Ev)

        flat_mask = segment_mask.reshape(-1)
        x = segment_embed.reshape(b * nl, -1)[flat_mask]                         # (Ntot,192)

        x = self._sage_conv(p["init_sage_conv"], x, edge_index)
        x = jax.nn.silu(x)
        x = layer_norm(x, p["init_norm"]["g"], p["init_norm"]["b"])
        for sp in p["encoders"]:
            x = self._sage_conv(sp, x, edge_index)

        d_out = x.shape[-1]
        idxs = jnp.nonzero(flat_mask)[0]
        out = jnp.zeros((b * nl, d_out), jnp.float32).at[idxs].set(x)
        return out.reshape(b, nl, d_out), discrete_segment_coords

    # -------------------- quantize --------------------
    def _residual_lfq(self, x, mask):
        # ResidualLFQ (vector-quantize-pytorch style) with sign quantization.
        # TODO(synk): LFQ entropy auxiliary loss not implemented (commit loss only).
        qp = self.params["quantizer"]
        xq = pallas_linear(x, qp["proj_in"]["w"], qp["proj_in"]["b"])            # (b,n,13)
        residual = xq
        quantized_out = jnp.zeros_like(xq)
        powers = (2 ** jnp.arange(self.codebook_dim)).astype(jnp.int32)
        all_idx, all_loss = [], []
        maskf = mask.astype(jnp.float32)
        denom = jnp.clip(maskf.sum(), 1.0, None)
        for qi in range(self.num_quantizers):
            scale = 2.0 ** (-qi)
            pos = residual > 0
            quantized = jnp.where(pos, scale, -scale)
            indices = jnp.sum(pos.astype(jnp.int32) * powers, axis=-1)
            mse = ((residual - quantized) ** 2).mean(axis=-1)
            all_loss.append(jnp.sum(mse * maskf) / denom)
            all_idx.append(indices)
            quantized_out = quantized_out + quantized
            residual = residual - quantized
        out = pallas_linear(quantized_out, qp["proj_out"]["w"], qp["proj_out"]["b"],
                            out_dtype=jnp.bfloat16)
        return out, jnp.stack(all_idx, axis=-1), jnp.stack(all_loss)

    def quantize(self, segments, segment_mask, segment_embed):
        p = self.params
        b, nl, _ = segments.shape
        # TODO(synk): int(max) requires concrete inputs; blocks end-to-end jit.
        num_vertices = int(segments.max()) + 1
        dim = self.dim_codebook

        segment_embed = pallas_linear(segment_embed, p["project_dim_codebook"]["w"],
                                      p["project_dim_codebook"]["b"])            # (b,nl,384)
        segment_embed = segment_embed.reshape(b, nl, 2, dim)

        pad_vertex_id = num_vertices
        vertices_buf = jnp.zeros((b, num_vertices + 1, dim), jnp.float32)
        segs = jnp.where(segment_mask[..., None], segments, pad_vertex_id)
        seg_flat = segs.reshape(b, nl * 2)
        se_flat = segment_embed.reshape(b, nl * 2, dim)
        averaged = scatter_mean(vertices_buf, seg_flat, se_flat)                 # (b,nv+1,dim)

        mask = jnp.ones((b, num_vertices + 1), bool).at[:, -1].set(False)
        quantized, codes, commit_loss = self._residual_lfq(averaged, mask)

        seg_out = jax.vmap(lambda q, i: q[i])(quantized, seg_flat).reshape(b, nl, 2 * dim)
        codes_out = jax.vmap(lambda c, i: c[i])(codes, seg_flat)                 # (b,2nl,q)
        m2 = jnp.repeat(segment_mask, 2, axis=1)[..., None]
        codes_out = jnp.where(m2, codes_out, self.pad_id)
        return seg_out, codes_out, commit_loss

    # -------------------- decode --------------------
    def decode(self, quantized, segment_mask):
        p = self.params
        maskf = segment_mask[..., None].astype(jnp.float32)                      # (b,nl,1)
        c, n = p["init_decoder_conv"], p["init_decoder_norm"]
        x = _pallas_init_decoder(quantized.astype(jnp.bfloat16), maskf,
                                 c["w"], c["b"], n["g"], n["b"])
        for rp in p["decoders"]:
            has_res = "res_w" in rp
            res = (rp["res_w"], rp["res_b"]) if has_res else ()
            se = rp["se"]
            x = _pallas_resnet(x, maskf,
                               rp["block1"]["w"], rp["block1"]["b"],
                               rp["block2"]["w"], rp["block2"]["b"],
                               se["w1"], se["b1"], se["w2"], se["b2"],
                               *res, has_res=has_res)
        return x                                                                 # (b,nl,384) bf16

    # -------------------- forward --------------------
    def forward(self, *, vertices, segments, segment_edges):
        p = self.params
        segment_mask = jnp.all(segments != self.pad_id, axis=-1)
        segment_edges_mask = jnp.all(segment_edges != self.pad_id, axis=-1)

        encoded, segment_coordinates = self.encode(vertices, segments, segment_edges,
                                                   segment_mask, segment_edges_mask)
        quantized, codes, commit_loss = self.quantize(segments, segment_mask, encoded)
        decoded = self.decode(quantized, segment_mask)

        b, nl = segment_mask.shape
        # fused to_coor matmul + Gaussian-blurred soft cross-entropy
        x2 = decoded.reshape(b * nl, -1)
        tgt = segment_coordinates.reshape(b * nl, 6).astype(jnp.int32)
        maskr = segment_mask.reshape(b * nl, 1).astype(jnp.float32)
        total_ce = _pallas_to_coor_loss(x2, p["to_coor"]["w"], p["to_coor"]["b"],
                                        tgt, maskr, gvals=self._gvals,
                                        num_classes=self.num_discrete_coors)
        denom = jnp.maximum(segment_mask.sum().astype(jnp.float32) * 6.0, 1.0)
        recon_loss = total_ce / denom

        total_loss = recon_loss + commit_loss.sum() * self.commit_loss_weight
        return total_loss


# ----------------------------------------------------------------------------
# main
# ----------------------------------------------------------------------------
if __name__ == "__main__":
    key = jax.random.PRNGKey(0)
    kv, ks, ke = jax.random.split(key, 3)

    b, nv, nl, ne = 2, 10, 8, 6
    pad_id = -1

    vertices = jax.random.uniform(kv, (b, nv, 3), jnp.float32, minval=-1.0, maxval=1.0)

    segments = jax.random.randint(ks, (b, nl, 2), 0, nv, dtype=jnp.int32)
    seg_pad = jnp.zeros((b, nl), bool).at[1, 6:].set(True)   # last 2 segments of batch 1 padded
    segments = jnp.where(seg_pad[..., None], pad_id, segments)

    segment_edges = jax.random.randint(ke, (b, ne, 2), 0, 6, dtype=jnp.int32)
    edge_pad = jnp.zeros((b, ne), bool).at[1, 5:].set(True)  # last edge of batch 1 padded
    segment_edges = jnp.where(edge_pad[..., None], pad_id, segment_edges)

    model = SegmentVQVAEPallas(jax.random.PRNGKey(42))
    loss = model.forward(vertices=vertices, segments=segments, segment_edges=segment_edges)
    jax.block_until_ready(loss)
    assert jnp.isfinite(loss)
    print("KERNEL_OK")
</pallas_src>

<mosaic_0001>
module attributes {stable_mosaic.version = 11 : i64} {
  func.func @_mm_kernel(%arg0: i32, %arg1: i32, %arg2: i32, %arg3: memref<16x768xbf16, #tpu.memory_space<vmem>>, %arg4: memref<768x256xbf16, #tpu.memory_space<vmem>>, %arg5: memref<1x256xf32, #tpu.memory_space<vmem>>, %arg6: memref<16x256xbf16, #tpu.memory_space<vmem>>, %arg7: memref<16x256xf32, #tpu.memory_space<vmem>>) attributes {dimension_semantics = [#tpu.dimension_semantics<parallel>, #tpu.dimension_semantics<parallel>, #tpu.dimension_semantics<arbitrary>], iteration_bounds = array<i64: 1, 1, 1>, scalar_prefetch = 0 : i64, scratch_operands = 1 : i64, tpu.core_type = #tpu.core_type<tc>, window_params = [{transform_indices = @transform_0, window_bounds = array<i64: 16, 768>}, {transform_indices = @transform_1, window_bounds = array<i64: 768, 256>}, {transform_indices = @transform_2, window_bounds = array<i64: 1, 256>}, {transform_indices = @transform_3, window_bounds = array<i64: 16, 256>}]} {
    %c0_i32 = arith.constant 0 : i32
    %0 = arith.cmpi eq, %arg2, %c0_i32 : i32
    %1 = arith.extui %0 : i1 to i32
    %c0_i32_0 = arith.constant 0 : i32
    %2 = arith.cmpi ne, %1, %c0_i32_0 : i32
    scf.if %2 {
      %cst_10 = arith.constant 0.000000e+00 : f32
      %12 = vector.broadcast %cst_10 : f32 to vector<16x256xf32>
      %c0_11 = arith.constant 0 : index
      %c0_12 = arith.constant 0 : index
      %13 = vector.load %arg7[%c0_11, %c0_12] : memref<16x256xf32, #tpu.memory_space<vmem>>, vector<16x256xf32>
      tpu.vector_store %arg7[%c0_11, %c0_12], %12 {strides = array<i32>} : memref<16x256xf32, #tpu.memory_space<vmem>>, vector<16x256xf32>,
    } else {
    }
    %c0 = arith.constant 0 : index
    %c0_1 = arith.constant 0 : index
    %3 = vector.load %arg7[%c0, %c0_1] : memref<16x256xf32, #tpu.memory_space<vmem>>, vector<16x256xf32>
    %c0_2 = arith.constant 0 : index
    %c0_3 = arith.constant 0 : index
    %4 = vector.load %arg3[%c0_2, %c0_3] : memref<16x768xbf16, #tpu.memory_space<vmem>>, vector<16x768xbf16>
    %c0_4 = arith.constant 0 : index
    %c0_5 = arith.constant 0 : index
    %5 = vector.load %arg4[%c0_4, %c0_5] : memref<768x256xbf16, #tpu.memory_space<vmem>>, vector<768x256xbf16>
    %cst = arith.constant dense<0.000000e+00> : vector<16x256xf32>
    %6 = tpu.matmul %4, %5, %cst {dimension_numbers = #tpu.dot_dimension_numbers<[1], [0], [0], [1], [0, 0, 1, 1], [], []>} : vector<16x768xbf16>, vector<768x256xbf16>, vector<16x256xf32> -> vector<16x256xf32>
    %7 = arith.addf %3, %6 : vector<16x256xf32>
    %c0_6 = arith.constant 0 : index
    %c0_7 = arith.constant 0 : index
    %8 = vector.load %arg7[%c0_6, %c0_7] : memref<16x256xf32, #tpu.memory_space<vmem>>, vector<16x256xf32>
    tpu.vector_store %arg7[%c0_6, %c0_7], %7 {strides = array<i32>} : memref<16x256xf32, #tpu.memory_space<vmem>>, vector<16x256xf32>,
    %c0_i32_8 = arith.constant 0 : i32
    %9 = arith.cmpi eq, %arg2, %c0_i32_8 : i32
    %10 = arith.extui %9 : i1 to i32
    %c0_i32_9 = arith.constant 0 : i32
    %11 = arith.cmpi ne, %10, %c0_i32_9 : i32
    scf.if %11 {
      %c0_10 = arith.constant 0 : index
      %c0_11 = arith.constant 0 : index
      %12 = vector.load %arg7[%c0_10, %c0_11] : memref<16x256xf32, #tpu.memory_space<vmem>>, vector<16x256xf32>
      %c0_12 = arith.constant 0 : index
      %c0_13 = arith.constant 0 : index
      %13 = vector.load %arg5[%c0_12, %c0_13] : memref<1x256xf32, #tpu.memory_space<vmem>>, vector<1x256xf32>
      %14 = vector.broadcast %13 : vector<1x256xf32> to vector<16x256xf32>
      %15 = arith.addf %12, %14 : vector<16x256xf32>
      %16 = arith.truncf %15 : vector<16x256xf32> to vector<16x256xbf16>
      %c0_14 = arith.constant 0 : index
      %c0_15 = arith.constant 0 : index
      %17 = vector.load %arg6[%c0_14, %c0_15] : memref<16x256xbf16, #tpu.memory_space<vmem>>, vector<16x256xbf16>
      tpu.vector_store %arg6[%c0_14, %c0_15], %16 {strides = array<i32>} : memref<16x256xbf16, #tpu.memory_space<vmem>>, vector<16x256xbf16>,
    } else {
    }
    return
  }
  func.func @transform_0(%arg0: i32, %arg1: i32, %arg2: i32) -> (i32, i32) {
    %c0_i32 = arith.constant 0 : i32
    return %arg0, %arg2 : i32, i32
  }
  func.func @transform_1(%arg0: i32, %arg1: i32, %arg2: i32) -> (i32, i32) {
    %c0_i32 = arith.constant 0 : i32
    return %arg2, %arg1 : i32, i32
  }
  func.func @transform_2(%arg0: i32, %arg1: i32, %arg2: i32) -> (i32, i32) {
    %c0_i32 = arith.constant 0 : i32
    %c0_i32_0 = arith.constant 0 : i32
    return %c0_i32, %arg1 : i32, i32
  }
  func.func @transform_3(%arg0: i32, %arg1: i32, %arg2: i32) -> (i32, i32) {
    %c0_i32 = arith.constant 0 : i32
    return %arg0, %arg1 : i32, i32
  }
}

</mosaic_0001>

<bundles_post_ra>
// kernel: _pallas_linear_2d.1
= control target key start
LH: loop header
LB: loop body
LE: loop exit
PB: predicated region body
PF: predicated region fallthrough
CT: control target
= control target key end

     0   :  { %s1467_s0 = inlined_call_operand.vmem [shape: bf16[16,768], index: 0, kind: input, shape index: {}]   ;;  %s1468_s1 = inlined_call_operand.vmem [shape: bf16[768,256], index: 1, kind: input, shape index: {}]   ;;  %s1469_s2 = inlined_call_operand.vmem [shape: f32[1,256], index: 2, kind: input, shape index: {}]   ;;  %s1470_s3 = inlined_call_operand.hbm [shape: bf16[16,256], index: 3, kind: output, shape index: {}]  }
   0x1   :  { %v946_v0 = vld [vmem:[%s1468_s1 + $0x104] ss:$8 sps:$4 sm:$0xff]   ;;  %v948_v1 = vld [vmem:[%s1468_s1 + $0x100] ss:$8 sps:$4 sm:$0xff]   ;;  %v949_v2 = vld [vmem:[%s1468_s1 + $0x114] ss:$8 sps:$4 sm:$0xff]  }
   0x2   :  { %682 = vmatprep.subr.bf16.mxu0 %v946_v0  ;;  %v951_v3 = vld [vmem:[%s1468_s1 + $0x110] ss:$8 sps:$4 sm:$0xff]   ;;  %v952_v4 = vld [vmem:[%s1468_s1 + $0x124] ss:$8 sps:$4 sm:$0xff]   ;;  %v954_v5 = vld [vmem:[%s1468_s1 + $0x120] ss:$8 sps:$4 sm:$0xff]  }
   0x3   :  { %683 = vmatpush1.bf16.msra.mxu0 %v948_v1  ;;  %v955_v6 = vld [vmem:[%s1468_s1 + $0x134] ss:$8 sps:$4 sm:$0xff]   ;;  %v957_v7 = vld [vmem:[%s1468_s1 + $0x130] ss:$8 sps:$4 sm:$0xff]   ;;  %v958_v8 = vld [vmem:[%s1468_s1 + $0x144] ss:$8 sps:$4 sm:$0xff]  }
   0x4   :  { %684 = vmatprep.subr.bf16.mxu0 %v949_v2  ;;  %v960_v9 = vld [vmem:[%s1468_s1 + $0x140] ss:$8 sps:$4 sm:$0xff]   ;;  %v961_v10 = vld [vmem:[%s1468_s1 + $0x154] ss:$8 sps:$4 sm:$0xff]   ;;  %v963_v11 = vld [vmem:[%s1468_s1 + $0x150] ss:$8 sps:$4 sm:$0xff]  }
   0x5   :  { %v964_v12 = vld [vmem:[%s1468_s1 + $0x164] ss:$8 sps:$4 sm:$0xff]   ;;  %v996_v14 = vld [vmem:[%s1468_s1] ss:$8 sps:$4 sm:$0xff]   ;;  %v967_v17 = vld [vmem:[%s1468_s1 + $0x174] ss:$8 sps:$4 sm:$0xff]  }
   0x6   :  { %v993_v13 = vld [vmem:[%s1468_s1 + $0x4] ss:$8 sps:$4 sm:$0xff]   ;;  %v966_v15 = vld [vmem:[%s1468_s1 + $0x160] ss:$8 sps:$4 sm:$0xff]   ;;  %v1003_v18 = vld [vmem:[%s1468_s1 + $0x14] ss:$8 sps:$4 sm:$0xff]  }
   0x7   :  { %685 = vmatpush1.bf16.msra.mxu0 %v951_v3  ;;  %639 = vmatprep.subr.bf16.mxu1 %v993_v13  ;;  %v999_v16 = vld [vmem:[%s1467_s0 + $0xc] ss:$24 sps:$4 sm:$0xff]   ;;  %v1005_v19 = vld [vmem:[%s1468_s1 + $0x10] ss:$8 sps:$4 sm:$0xff]   ;;  %v1011_v23 = vld [vmem:[%s1468_s1 + $0x20] ss:$8 sps:$4 sm:$0xff]  }
   0x8   :  { %686 = vmatprep.subr.bf16.mxu0 %v952_v4  ;;  %640 = vmatpush1.bf16.msra.mxu1 %v996_v14  ;;  %v969_v20 = vld [vmem:[%s1468_s1 + $0x170] ss:$8 sps:$4 sm:$0xff]   ;;  %v970_v21 = vld [vmem:[%s1468_s1 + $0x184] ss:$8 sps:$4 sm:$0xff]   ;;  %v972_v24 = vld [vmem:[%s1468_s1 + $0x180] ss:$8 sps:$4 sm:$0xff]  }
   0x9   :  { %714 = vmatprep.mubr.bf16.mxu0 %v999_v16  ;;  %641 = vmatprep.subr.bf16.mxu1 %v1003_v18  ;;  %v1009_v22 = vld [vmem:[%s1468_s1 + $0x24] ss:$8 sps:$4 sm:$0xff]   ;;  %v1015_v25 = vld [vmem:[%s1468_s1 + $0x34] ss:$8 sps:$4 sm:$0xff]   ;;  %v1017_v27 = vld [vmem:[%s1468_s1 + $0x30] ss:$8 sps:$4 sm:$0xff]  }
   0xa   :  { %v973_v26 = vld [vmem:[%s1468_s1 + $0x194] ss:$8 sps:$4 sm:$0xff]   ;;  %v1021_v28 = vld [vmem:[%s1468_s1 + $0x44] ss:$8 sps:$4 sm:$0xff]   ;;  %v975_v29 = vld [vmem:[%s1468_s1 + $0x190] ss:$8 sps:$4 sm:$0xff]  }
   0xb   :  { %687 = vmatpush1.bf16.msra.mxu0 %v954_v5  ;;  %v976_v30 = vld [vmem:[%s1468_s1 + $0x1a4] ss:$8 sps:$4 sm:$0xff]   ;;  %v1023_v31 = vld [vmem:[%s1468_s1 + $0x40] ss:$8 sps:$4 sm:$0xff]   ;;  %v1027_v32 = vld [vmem:[%s1468_s1 + $0x54] ss:$8 sps:$4 sm:$0xff]  }
   0xc   :  { %688 = vmatprep.subr.bf16.mxu0 %v955_v6  ;;  %642 = vmatpush1.bf16.msra.mxu1 %v1005_v19  ;;  %v978_v33 = vld [vmem:[%s1468_s1 + $0x1a0] ss:$8 sps:$4 sm:$0xff]   ;;  %v979_v34 = vld [vmem:[%s1468_s1 + $0x1b4] ss:$8 sps:$4 sm:$0xff]   ;;  %v1029_v35 = vld [vmem:[%s1468_s1 + $0x50] ss:$8 sps:$4 sm:$0xff]  }
   0xd   :  { %643 = vmatprep.subr.bf16.mxu1 %v1009_v22  ;;  %v1033_v36 = vld [vmem:[%s1468_s1 + $0x64] ss:$8 sps:$4 sm:$0xff]   ;;  %v981_v37 = vld [vmem:[%s1468_s1 + $0x1b0] ss:$8 sps:$4 sm:$0xff]   ;;  %v1035_v39 = vld [vmem:[%s1468_s1 + $0x60] ss:$8 sps:$4 sm:$0xff]  }
   0xe   :  { %v982_v38 = vld [vmem:[%s1468_s1 + $0x1c4] ss:$8 sps:$4 sm:$0xff]   ;;  %v1039_v40 = vld [vmem:[%s1468_s1 + $0x74] ss:$8 sps:$4 sm:$0xff]   ;;  %v984_v41 = vld [vmem:[%s1468_s1 + $0x1c0] ss:$8 sps:$4 sm:$0xff]  }
   0xf   :  { %689 = vmatpush1.bf16.msra.mxu0 %v957_v7  ;;  %v985_v42 = vld [vmem:[%s1468_s1 + $0x1d4] ss:$8 sps:$4 sm:$0xff]   ;;  %v1041_v43 = vld [vmem:[%s1468_s1 + $0x70] ss:$8 sps:$4 sm:$0xff]   ;;  %v1045_v44 = vld [vmem:[%s1468_s1 + $0x84] ss:$8 sps:$4 sm:$0xff]  }
  0x10   :  { %690 = vmatprep.subr.bf16.mxu0 %v958_v8  ;;  %644 = vmatpush1.bf16.msra.mxu1 %v1011_v23  ;;  %v987_v45 = vld [vmem:[%s1468_s1 + $0x1d0] ss:$8 sps:$4 sm:$0xff]   ;;  %v988_v46 = vld [vmem:[%s1468_s1 + $0x1e4] ss:$8 sps:$4 sm:$0xff]   ;;  %v1047_v47 = vld [vmem:[%s1468_s1 + $0x80] ss:$8 sps:$4 sm:$0xff]  }
  0x11   :  { %645 = vmatprep.subr.bf16.mxu1 %v1015_v25  ;;  %v1051_v48 = vld [vmem:[%s1468_s1 + $0x94] ss:$8 sps:$4 sm:$0xff]   ;;  %v990_v49 = vld [vmem:[%s1468_s1 + $0x1e0] ss:$8 sps:$4 sm:$0xff]   ;;  %v1053_v51 = vld [vmem:[%s1468_s1 + $0x90] ss:$8 sps:$4 sm:$0xff]  }
  0x12   :  { %v991_v50 = vld [vmem:[%s1468_s1 + $0x1f4] ss:$8 sps:$4 sm:$0xff]   ;;  %v1057_v52 = vld [vmem:[%s1468_s1 + $0xa4] ss:$8 sps:$4 sm:$0xff]   ;;  %v995_v53 = vld [vmem:[%s1468_s1 + $0x1f0] ss:$8 sps:$4 sm:$0xff]  }
  0x13   :  { %691 = vmatpush1.bf16.msra.mxu0 %v960_v9  ;;  %v1002_v54 = vld [vmem:[%s1468_s1 + $0x204] ss:$8 sps:$4 sm:$0xff]   ;;  %v1059_v55 = vld [vmem:[%s1468_s1 + $0xa0] ss:$8 sps:$4 sm:$0xff]   ;;  %v1063_v57 = vld [vmem:[%s1468_s1 + $0xb4] ss:$8 sps:$4 sm:$0xff]  }
  0x14   :  { %692 = vmatprep.subr.bf16.mxu0 %v961_v10  ;;  %646 = vmatpush1.bf16.msra.mxu1 %v1017_v27  ;;  %v997_v56 = vld [vmem:[%s1467_s0 + $0x8] ss:$24 sps:$4 sm:$0xff]   ;;  %v1008_v59 = vld [vmem:[%s1468_s1 + $0x214] ss:$8 sps:$4 sm:$0xff]   ;;  %v1065_v60 = vld [vmem:[%s1468_s1 + $0xb0] ss:$8 sps:$4 sm:$0xff]  }
  0x15   :  { %647 = vmatprep.subr.bf16.mxu1 %v1021_v28  ;;  %v1000_v58 = vld [vmem:[%s1468_s1 + $0x200] ss:$8 sps:$4 sm:$0xff]   ;;  %v1092_v61 = vld [vmem:[%s1467_s0 + $0x4] ss:$24 sps:$4 sm:$0xff]   ;;  %v1006_v63 = vld [vmem:[%s1468_s1 + $0x210] ss:$8 sps:$4 sm:$0xff]  }
  0x16   :  { %v1069_v62 = vld [vmem:[%s1468_s1 + $0xc4] ss:$8 sps:$4 sm:$0xff]   ;;  %671 = vmatprep.mubr.bf16.mxu1 %v1092_v61 }
  0x17   :  { %693 = vmatpush1.bf16.msra.mxu0 %v963_v11  ;;  %v1098_v0 = vld [vmem:[%s1467_s0 + $0x14] ss:$24 sps:$4 sm:$0xff]  }
  0x18   :  { %694 = vmatprep.subr.bf16.mxu0 %v964_v12  ;;  %648 = vmatpush1.bf16.msra.mxu1 %v1023_v31  ;;  %v1014_v1 = vld [vmem:[%s1468_s1 + $0x224] ss:$8 sps:$4 sm:$0xff]  }
  0x19   :  { %649 = vmatprep.subr.bf16.mxu1 %v1027_v32 }
  0x1b   :  { %695 = vmatpush1.bf16.msra.mxu0 %v966_v15 }
  0x1c   :  { %696 = vmatprep.subr.bf16.mxu0 %v967_v17  ;;  %650 = vmatpush1.bf16.msra.mxu1 %v1029_v35 }
  0x1d   :  { %651 = vmatprep.subr.bf16.mxu1 %v1033_v36 }
  0x1f   :  { %697 = vmatpush1.bf16.msra.mxu0 %v969_v20 }
  0x20   :  { %698 = vmatprep.subr.bf16.mxu0 %v970_v21  ;;  %652 = vmatpush1.bf16.msra.mxu1 %v1035_v39 }
  0x21   :  { %653 = vmatprep.subr.bf16.mxu1 %v1039_v40 }
  0x23   :  { %699 = vmatpush1.bf16.msra.mxu0 %v972_v24 }
  0x24   :  { %700 = vmatprep.subr.bf16.mxu0 %v973_v26  ;;  %654 = vmatpush1.bf16.msra.mxu1 %v1041_v43 }
  0x25   :  { %655 = vmatprep.subr.bf16.mxu1 %v1045_v44 }
  0x27   :  { %701 = vmatpush1.bf16.msra.mxu0 %v975_v29 }
  0x28   :  { %702 = vmatprep.subr.bf16.mxu0 %v976_v30  ;;  %656 = vmatpush1.bf16.msra.mxu1 %v1047_v47 }
  0x29   :  { %657 = vmatprep.subr.bf16.mxu1 %v1051_v48 }
  0x2b   :  { %703 = vmatpush1.bf16.msra.mxu0 %v978_v33 }
  0x2c   :  { %704 = vmatprep.subr.bf16.mxu0 %v979_v34  ;;  %658 = vmatpush1.bf16.msra.mxu1 %v1053_v51 }
  0x2d   :  { %659 = vmatprep.subr.bf16.mxu1 %v1057_v52 }
  0x2f   :  { %705 = vmatpush1.bf16.msra.mxu0 %v981_v37 }
  0x30   :  { %706 = vmatprep.subr.bf16.mxu0 %v982_v38  ;;  %660 = vmatpush1.bf16.msra.mxu1 %v1059_v55 }
  0x31   :  { %661 = vmatprep.subr.bf16.mxu1 %v1063_v57 }
  0x33   :  { %707 = vmatpush1.bf16.msra.mxu0 %v984_v41 }
  0x34   :  { %708 = vmatprep.subr.bf16.mxu0 %v985_v42 }
  0x37   :  { %709 = vmatpush1.bf16.msra.mxu0 %v987_v45 }
  0x38   :  { %710 = vmatprep.subr.bf16.mxu0 %v988_v46 }
  0x3b   :  { %711 = vmatpush1.bf16.msra.mxu0 %v990_v49 }
  0x3c   :  { %712 = vmatprep.subr.bf16.mxu0 %v991_v50 }
  0x3f   :  { %713 = vmatpush1.bf16.msra.mxu0 %v995_v53 }
  0x40   :  { %725 = vmatprep.subr.bf16.mxu0 %v1002_v54 }
  0x42   :  { %715 = vmatmul.mubr.bf16.vlgmr.msra.gmra.mrb[0].mxu0 %v997_v56 }
  0x43   :  { %726 = vmatpush1.bf16.msra.mxu0 %v1000_v58 }
  0x44   :  { %727 = vmatprep.subr.bf16.mxu0 %v1008_v59 }
  0x45   :  { %8 = vsyncpa [#allocation4], 0  ;;  %662 = vmatpush1.bf16.msra.mxu1 %v1065_v60  ;;  %v1071_v2 = vld [vmem:[%s1468_s1 + $0xc0] ss:$8 sps:$4 sm:$0xff]   ;;  %757 = vmatprep.mubr.bf16.mxu0 %v1098_v0  ;;  %v1075_v3 = vld [vmem:[%s1468_s1 + $0xd4] ss:$8 sps:$4 sm:$0xff]   ;;  %v785_v42 = vlaneseq }
  0x46   :  { %663 = vmatprep.subr.bf16.mxu1 %v1069_v62  ;;  %v1012_v4 = vld [vmem:[%s1468_s1 + $0x220] ss:$8 sps:$4 sm:$0xff]   ;;  %v1020_v5 = vld [vmem:[%s1468_s1 + $0x234] ss:$8 sps:$4 sm:$0xff]   ;;  %v1077_v6 = vld [vmem:[%s1468_s1 + $0xd0] ss:$8 sps:$4 sm:$0xff]  }
  0x47   :  { %728 = vmatpush1.bf16.msra.mxu0 %v1006_v63  ;;  %v1081_v7 = vld [vmem:[%s1468_s1 + $0xe4] ss:$8 sps:$4 sm:$0xff]   ;;  %v1018_v8 = vld [vmem:[%s1468_s1 + $0x230] ss:$8 sps:$4 sm:$0xff]   ;;  %v1083_v10 = vld [vmem:[%s1468_s1 + $0xe0] ss:$8 sps:$4 sm:$0xff]  }
  0x48   :  { %729 = vmatprep.subr.bf16.mxu0 %v1014_v1  ;;  %v1026_v9 = vld [vmem:[%s1468_s1 + $0x244] ss:$8 sps:$4 sm:$0xff]   ;;  %v1087_v11 = vld [vmem:[%s1468_s1 + $0xf4] ss:$8 sps:$4 sm:$0xff]   ;;  %v1024_v12 = vld [vmem:[%s1468_s1 + $0x240] ss:$8 sps:$4 sm:$0xff]  }
  0x49   :  { %664 = vmatpush1.bf16.msra.mxu1 %v1071_v2  ;;  %v1032_v13 = vld [vmem:[%s1468_s1 + $0x254] ss:$8 sps:$4 sm:$0xff]   ;;  %v1089_v14 = vld [vmem:[%s1468_s1 + $0xf0] ss:$8 sps:$4 sm:$0xff]   ;;  %v1038_v16 = vld [vmem:[%s1468_s1 + $0x264] ss:$8 sps:$4 sm:$0xff]  }
  0x4a   :  { %665 = vmatprep.subr.bf16.mxu1 %v1075_v3  ;;  %v1030_v15 = vld [vmem:[%s1468_s1 + $0x250] ss:$8 sps:$4 sm:$0xff]   ;;  %v1036_v18 = vld [vmem:[%s1468_s1 + $0x260] ss:$8 sps:$4 sm:$0xff]   ;;  %v1044_v19 = vld [vmem:[%s1468_s1 + $0x274] ss:$8 sps:$4 sm:$0xff]  }
  0x4b   :  { %730 = vmatpush1.bf16.msra.mxu0 %v1012_v4  ;;  %v1090_v17 = vld [vmem:[%s1467_s0] ss:$24 sps:$4 sm:$0xff]   ;;  %v1050_v21 = vld [vmem:[%s1468_s1 + $0x284] ss:$8 sps:$4 sm:$0xff]   ;;  %v1056_v23 = vld [vmem:[%s1468_s1 + $0x294] ss:$8 sps:$4 sm:$0xff]  }
  0x4c   :  { %731 = vmatprep.subr.bf16.mxu0 %v1020_v5  ;;  %v1042_v20 = vld [vmem:[%s1468_s1 + $0x270] ss:$8 sps:$4 sm:$0xff]   ;;  %v1048_v22 = vld [vmem:[%s1468_s1 + $0x280] ss:$8 sps:$4 sm:$0xff]   ;;  %v1062_v25 = vld [vmem:[%s1468_s1 + $0x2a4] ss:$8 sps:$4 sm:$0xff]  }
  0x4d   :  { %666 = vmatpush1.bf16.msra.mxu1 %v1077_v6  ;;  %v1054_v24 = vld [vmem:[%s1468_s1 + $0x290] ss:$8 sps:$4 sm:$0xff]   ;;  %v1060_v26 = vld [vmem:[%s1468_s1 + $0x2a0] ss:$8 sps:$4 sm:$0xff]   ;;  %v1068_v27 = vld [vmem:[%s1468_s1 + $0x2b4] ss:$8 sps:$4 sm:$0xff]  }
  0x4e   :  { %667 = vmatprep.subr.bf16.mxu1 %v1081_v7  ;;  %v1066_v28 = vld [vmem:[%s1468_s1 + $0x2b0] ss:$8 sps:$4 sm:$0xff]   ;;  %v1074_v29 = vld [vmem:[%s1468_s1 + $0x2c4] ss:$8 sps:$4 sm:$0xff]   ;;  %v1072_v30 = vld [vmem:[%s1468_s1 + $0x2c0] ss:$8 sps:$4 sm:$0xff]  }
  0x4f   :  { %732 = vmatpush1.bf16.msra.mxu0 %v1018_v8  ;;  %v1080_v31 = vld [vmem:[%s1468_s1 + $0x2d4] ss:$8 sps:$4 sm:$0xff]   ;;  %v1078_v32 = vld [vmem:[%s1468_s1 + $0x2d0] ss:$8 sps:$4 sm:$0xff]   ;;  %v1086_v33 = vld [vmem:[%s1468_s1 + $0x2e4] ss:$8 sps:$4 sm:$0xff]  }
  0x50   :  { %733 = vmatprep.subr.bf16.mxu0 %v1026_v9  ;;  %v1084_v34 = vld [vmem:[%s1468_s1 + $0x2e0] ss:$8 sps:$4 sm:$0xff]   ;;  %v1095_v35 = vld [vmem:[%s1468_s1 + $0x2f4] ss:$8 sps:$4 sm:$0xff]   ;;  %v1093_v36 = vld [vmem:[%s1468_s1 + $0x2f0] ss:$8 sps:$4 sm:$0xff]  }
  0x51   :  { %668 = vmatpush1.bf16.msra.mxu1 %v1083_v10  ;;  %v1096_v37 = vld [vmem:[%s1467_s0 + $0x10] ss:$24 sps:$4 sm:$0xff]   ;;  %v786_v43 = vshrl.u32 %v785_v42, 7  ;;  %v783_v45 = vld [vmem:[%s1469_s2] sm:$0x3]  ;;  %s1123_s0 = smov [#allocation3]  }
  0x52   :  { %669 = vmatprep.subr.bf16.mxu1 %v1087_v11  ;;  %s818_s1 = sshll.u32 %s1123_s0, 4  ;;  %s819_s1 = int_to_ptr.vmem [resolvable:$true] %s818_s1 }
  0x53   :  { %734 = vmatpush1.bf16.msra.mxu0 %v1024_v12  ;;  %v787_v44 = vsub.s32 0, %v786_v43  ;;  %v791_v46 = vsub.s32 1, %v786_v43  ;;  %s1099_s2 = scalar_lea.vmem %s819_s1, 256  ;;  %p1104_p1 = scmp.lt.s32.totalorder %s819_s1, %s819_s1 }
  0x54   :  { %735 = vmatprep.subr.bf16.mxu0 %v1032_v13  ;;  %p1100_p0 = scmp.ne.s32.totalorder %s819_s1, %s1099_s2  ;;  %p1105_p2 = scmp.lt.s32.totalorder %s1099_s2, %s1099_s2 }
  0x55   :  { %670 = vmatpush1.bf16.msra.mxu1 %v1089_v14  ;;  %v788_v47 = vrot.slane %v783_v45, %v787_v44  ;;  %v792_v49 = vrot.slane %v783_v45, %v791_v46 }
  0x56   :  { %p1106_p3 = por %p1105_p2, %p1104_p1 }
  0x57   :  { %736 = vmatpush1.bf16.msra.mxu0 %v1030_v15 }
  0x58   :  { %737 = vmatprep.subr.bf16.mxu0 %v1038_v16  ;;  %672 = vmatmul.mubr.bf16.vlgmr.msra.gmra.mrb[0].mxu1 %v1090_v17  ;;  %p1107_p4 = pnand %p1106_p3, %p1100_p0 }
  0x5b   :  { %738 = vmatpush1.bf16.msra.mxu0 %v1036_v18 }
  0x5c   :  { %739 = vmatprep.subr.bf16.mxu0 %v1044_v19 }
  0x5f   :  { %740 = vmatpush1.bf16.msra.mxu0 %v1042_v20 }
  0x60   :  { %741 = vmatprep.subr.bf16.mxu0 %v1050_v21 }
  0x63   :  { %742 = vmatpush1.bf16.msra.mxu0 %v1048_v22 }
  0x64   :  { %743 = vmatprep.subr.bf16.mxu0 %v1056_v23 }
  0x67   :  { %744 = vmatpush1.bf16.msra.mxu0 %v1054_v24 }
  0x68   :  { %745 = vmatprep.subr.bf16.mxu0 %v1062_v25 }
  0x6b   :  { %746 = vmatpush1.bf16.msra.mxu0 %v1060_v26 }
  0x6c   :  { %747 = vmatprep.subr.bf16.mxu0 %v1068_v27 }
  0x6f   :  { %748 = vmatpush1.bf16.msra.mxu0 %v1066_v28 }
  0x70   :  { %749 = vmatprep.subr.bf16.mxu0 %v1074_v29 }
  0x73   :  { %750 = vmatpush1.bf16.msra.mxu0 %v1072_v30 }
  0x74   :  { %751 = vmatprep.subr.bf16.mxu0 %v1080_v31 }
  0x77   :  { %752 = vmatpush1.bf16.msra.mxu0 %v1078_v32 }
  0x78   :  { %753 = vmatprep.subr.bf16.mxu0 %v1086_v33 }
  0x7b   :  { %754 = vmatpush1.bf16.msra.mxu0 %v1084_v34 }
  0x7c   :  { %755 = vmatprep.subr.bf16.mxu0 %v1095_v35 }
  0x7f   :  { %756 = vmatpush1.bf16.msra.mxu0 %v1093_v36 }
  0x82   :  { %758 = vmatmul.mubr.bf16.vlgmr.msra.gmra.mrb[0].mxu0 %v1096_v37 }
 0x12b   :  { %v673_v38 = vpop.f32.mrb[0].mxu1 }
 0x12c   :  { %v675_v39 = vpop.f32.mrb[1].mxu1 }
 0x12d   :  { %v677_v40 = vpop.f32.mrb[2].mxu1 }
 0x12e   :  { %v679_v41 = vpop.f32.mrb[3].mxu1 }
 0x155   :  { %v759_v48 = vpop.f32.mrb[0].mxu0 }
 0x156   :  { %v935_v50 = vadd.f32 %v759_v48, %v673_v38  ;;  %v761_v51 = vpop.f32.mrb[1].mxu0 }
 0x157   :  { %v936_v52 = vadd.f32 %v761_v51, %v675_v39  ;;  %v763_v53 = vpop.f32.mrb[2].mxu0 }
 0x158   :  { %v795_v54 = vadd.f32 %v935_v50, %v788_v47  ;;  %v937_v55 = vadd.f32 %v763_v53, %v677_v40  ;;  %v765_v56 = vpop.f32.mrb[3].mxu0 }
 0x159   :  { %v796_v57 = vadd.f32 %v936_v52, %v792_v49  ;;  %v938_v58 = vadd.f32 %v765_v56, %v679_v41 }
 0x15a   :  { %v797_v59 = vadd.f32 %v937_v55, %v788_v47 }
 0x15b   :  { %v933_v60 = vpack.c.bf16 %v796_v57, %v795_v54  ;;  %v798_v61 = vadd.f32 %v938_v58, %v792_v49 }
 0x15d   :  { %811 = vst [vmem:[#allocation3] sm:$0xff] %v933_v60  ;;  %v934_v62 = vpack.c.bf16 %v798_v61, %v797_v59 }
 0x15f   :  { %812 = vst [vmem:[#allocation3 + $0x8] sm:$0xff] %v934_v62 }
 0x160   :  { %1110 = shalt.err (!%p1107_p4)
}
 0x161   :  { %s1111_s4 = scalar_lea.hbm %s1470_s3, 256 }
 0x162   :  { %p1112_p5 = scmp.ne.s32.totalorder %s1470_s3, %s1111_s4  ;;  %p1115_p6 = scmp.lt.u32.totalorder %s1111_s4, %s1470_s3 }
 0x164   :  { %p1117_p7 = pnand %p1115_p6, %p1112_p5 }
 0x166   :  { %1120 = shalt.err (!%p1117_p7)
}
 0x167   :  { %s1124_s9 = smov 128   ;;  %s1125_s10 = smov 8  }
 0x168   :  { %824 = dma.vmem_to_hbm [thread:$0]  %s819_s1, 256, %s1470_s3, [#allocation4], %s1124_s9, %s1124_s9, %s1125_s10  }
 0x169   :  { %1121 = dma.done.wait [#allocation4], 256  }
 0x16a   :  { %1122 = vsyncadd [#allocation4], 4294967040 }
 0x16b   :  { %828 = vsyncpa [#allocation4], 1 }

</bundles_post_ra>
